<compile_context>
chip_gen: v7x
topology: tpu7x:2x2x1
jax: 0.10.0
libtpu: 0.0.40
codegen_flags: <defaults>
</compile_context>

<pallas_src>
import functools
import numpy as np
import jax
import jax.numpy as jnp
from jax.experimental import pallas as pl
from jax.experimental.pallas import tpu as pltpu


def encoder_layer_kernel(
    x_ref,
    wqkv_ref, bqkv_ref, wo_ref, bo_ref,
    ln1g_ref, ln1b_ref,
    w1_ref, b1_ref, w2_ref, b2_ref,
    ln2g_ref, ln2b_ref,
    out_ref,
    *, head_num, head_dim, eps,
):
    blk, L, D = x_ref.shape
    M = blk * L

    # Flatten (batch_block, L) -> M rows: every dense matmul is one MXU push.
    x = x_ref[...].reshape(M, D)                       # f32 residual stream
    x_bf = x.astype(jnp.bfloat16)

    # ---- fused QKV projection: bf16 x bf16 -> f32 accumulation --------------
    qkv = jnp.dot(x_bf, wqkv_ref[...],
                  preferred_element_type=jnp.float32) + bqkv_ref[...]

    # ---- multi-head self attention -------------------------------------------
    head_outs = []
    for h in range(head_num):
        qo = h * head_dim
        ko = D + h * head_dim
        vo = 2 * D + h * head_dim
        qh = qkv[:, qo:qo + head_dim].reshape(blk, L, head_dim).astype(jnp.bfloat16)
        kh = qkv[:, ko:ko + head_dim].reshape(blk, L, head_dim).astype(jnp.bfloat16)
        vh = qkv[:, vo:vo + head_dim].reshape(blk, L, head_dim).astype(jnp.bfloat16)

        # contract last dims of both operands (no explicit kh.T / XLU transpose)
        s = jnp.einsum("bqd,bkd->bqk", qh, kh,
                       preferred_element_type=jnp.float32)
        s = s - jnp.max(s, axis=-1, keepdims=True)
        p = jnp.exp(s)
        # EUP reciprocal; normalization applied to the (blk, L, hd) output below
        # (L*hd multiplies per row instead of L*L).
        inv = pl.reciprocal(jnp.sum(p, axis=-1, keepdims=True), approx=True)
        o = jnp.einsum("bqk,bkd->bqd", p.astype(jnp.bfloat16), vh,
                       preferred_element_type=jnp.float32)
        head_outs.append(o * inv)

    # concat heads once, single (M, D) @ (D, D) output projection + bias
    att = jnp.concatenate(head_outs, axis=-1).reshape(M, D)
    att = jnp.dot(att.astype(jnp.bfloat16), wo_ref[...],
                  preferred_element_type=jnp.float32) + bo_ref[...]

    # ---- residual + LayerNorm 1 (single-pass mean / mean-of-squares) ---------
    h1 = att + x
    mu1 = jnp.mean(h1, axis=-1, keepdims=True)
    var1 = jnp.mean(h1 * h1, axis=-1, keepdims=True) - mu1 * mu1
    n1 = (h1 - mu1) * jax.lax.rsqrt(var1 + eps) * ln1g_ref[...] + ln1b_ref[...]

    # ---- feedforward: Linear -> ReLU -> Linear -> ReLU (dropout = identity) ---
    f = jnp.dot(n1.astype(jnp.bfloat16), w1_ref[...],
                preferred_element_type=jnp.float32) + b1_ref[...]
    f = jnp.maximum(f, 0.0)
    f = jnp.dot(f.astype(jnp.bfloat16), w2_ref[...],
                preferred_element_type=jnp.float32) + b2_ref[...]
    f = jnp.maximum(f, 0.0)

    # ---- residual + LayerNorm 2 ----------------------------------------------
    h2 = f + n1
    mu2 = jnp.mean(h2, axis=-1, keepdims=True)
    var2 = jnp.mean(h2 * h2, axis=-1, keepdims=True) - mu2 * mu2
    n2 = (h2 - mu2) * jax.lax.rsqrt(var2 + eps) * ln2g_ref[...] + ln2b_ref[...]

    out_ref[...] = n2.reshape(blk, L, D).astype(out_ref.dtype)


def _tpu_vmem_and_cores():
    """Physical VMEM bytes and TensorCore count (best effort, safe fallback)."""
    vmem_cap = 64 * 1024 * 1024   # conservative (v7x per-TC) fallback
    num_cores = 1
    try:
        info = pltpu.get_tpu_info()
        vmem_cap = int(info.vmem_capacity_bytes)
        for attr in ("num_tensorcores", "tensorcore_count", "num_cores",
                     "cores_per_chip"):
            if hasattr(info, attr):
                num_cores = max(1, int(getattr(info, attr)))
                break
    except Exception:
        pass
    return vmem_cap, num_cores


def _pick_batch_block(B, L, D, F, weight_bytes, vmem_budget, num_cores):
    """Largest divisor of B whose per-step working set fits the VMEM budget.
    Keeps >= 2 parallel grid steps only on multi-TensorCore chips (v7x); on
    single-TC v5e/v6e the grid is a serial loop, so the largest block wins
    (bigger M per MXU push, fewer ~0.35us per-step overheads)."""
    def step_bytes(blk):
        M = blk * L
        b = 0
        b += 2 * 2 * blk * L * D * 4        # x and out blocks, double-buffered (f32)
        b += M * 3 * D * (4 + 2)            # qkv f32 + bf16 operand copies
        b += 2 * blk * L * L * 4            # scores + probs (one head live at a time)
        b += 2 * M * D * 4                  # head outputs + attention projection
        b += M * F * (4 + 2)                # FFN intermediate f32 + bf16 cast
        b += 6 * M * D * 4                  # residual / LayerNorm temporaries (slack)
        return b

    best = 1
    for cand in range(1, B + 1):
        if B % cand:
            continue
        if num_cores >= 2 and B > 1 and (B // cand) < 2:
            continue
        if weight_bytes + step_bytes(cand) <= vmem_budget:
            best = cand
    return best


def transformer_encoder_layer(x, params, *, head_num, batch_block=None):
    B, L, D = x.shape
    assert D % head_num == 0
    head_dim = D // head_num
    F = params["w1"].shape[1]
    temperature = float(np.sqrt(head_num * head_dim))

    # Fuse Wq|Wk|Wv into one (D, 3D) weight; bake 1/temperature into the Q
    # columns; cast matmul weights to bf16 ONCE here so the VMEM-resident
    # copies (and their HBM->VMEM DMA) are already half width.
    wqkv = jnp.concatenate(
        [params["wq"] / temperature, params["wk"], params["wv"]], axis=1
    ).astype(jnp.bfloat16)
    bqkv = jnp.concatenate(
        [params["bq"] / temperature, params["bk"], params["bv"]], axis=1
    ).astype(jnp.float32)

    param_list = [
        wqkv, bqkv,
        params["wo"].astype(jnp.bfloat16), params["bo"],
        params["ln1_g"], params["ln1_b"],
        params["w1"].astype(jnp.bfloat16), params["b1"],
        params["w2"].astype(jnp.bfloat16), params["b2"],
        params["ln2_g"], params["ln2_b"],
    ]
    weight_bytes = sum(int(np.prod(p.shape)) * p.dtype.itemsize for p in param_list)

    vmem_cap, num_cores = _tpu_vmem_and_cores()
    vmem_limit = int(min(vmem_cap * 3 // 4, 100 * 1024 * 1024))
    if batch_block is None:
        batch_block = _pick_batch_block(
            B, L, D, F, weight_bytes, int(vmem_limit * 0.8), num_cores)
    assert B % batch_block == 0

    kernel = functools.partial(
        encoder_layer_kernel, head_num=head_num, head_dim=head_dim, eps=1e-5)

    # Weights / biases: whole-array VMEM residents (single copy, not part of
    # the double-buffered pipeline); only the activation blocks are pipelined.
    weight_specs = [pl.BlockSpec(memory_space=pltpu.MemorySpace.VMEM)
                    for _ in param_list]

    grid = (B // batch_block,)
    return pl.pallas_call(
        kernel,
        grid=grid,
        in_specs=[pl.BlockSpec((batch_block, L, D), lambda b: (b, 0, 0))]
                 + weight_specs,
        out_specs=pl.BlockSpec((batch_block, L, D), lambda b: (b, 0, 0)),
        out_shape=jax.ShapeDtypeStruct((B, L, D), jnp.float32),
        compiler_params=pltpu.CompilerParams(
            dimension_semantics=("parallel",),
            vmem_limit_bytes=vmem_limit),
    )(x, *param_list)


def _reference(x, params, head_num):
    """Pure-JAX f32 reference matching the PyTorch forward (eval mode)."""
    B, L, D = x.shape
    hd = D // head_num
    temp = np.sqrt(head_num * hd)

    def linear(a, w, b):
        return a @ w + b

    q = linear(x, params["wq"], params["bq"]).reshape(B, L, head_num, hd).transpose(0, 2, 1, 3)
    k = linear(x, params["wk"], params["bk"]).reshape(B, L, head_num, hd).transpose(0, 2, 1, 3)
    v = linear(x, params["wv"], params["bv"]).reshape(B, L, head_num, hd).transpose(0, 2, 1, 3)
    attn = jnp.einsum("bhqd,bhkd->bhqk", q, k) / temp
    attn = jax.nn.softmax(attn, axis=-1)
    out = jnp.einsum("bhqk,bhkd->bhqd", attn, v)
    out = out.transpose(0, 2, 1, 3).reshape(B, L, D)
    att = linear(out, params["wo"], params["bo"])

    def ln(a, g, b, eps=1e-5):
        mu = jnp.mean(a, -1, keepdims=True)
        var = jnp.mean((a - mu) ** 2, -1, keepdims=True)
        return (a - mu) * jax.lax.rsqrt(var + eps) * g + b

    n1 = ln(att + x, params["ln1_g"], params["ln1_b"])
    f = jnp.maximum(linear(n1, params["w1"], params["b1"]), 0.0)
    f = jnp.maximum(linear(f, params["w2"], params["b2"]), 0.0)
    return ln(f + n1, params["ln2_g"], params["ln2_b"])


if __name__ == "__main__":
    # Small, TransformerEncoderLayer-consistent shapes.
    B, L, D = 2, 8, 32          # batch, seq, input_size (hidden)
    F = 64                      # filter_size
    H = 4                       # head_num  (head_dim = 8)

    key = jax.random.PRNGKey(0)
    ks = jax.random.split(key, 16)

    def w(k, shape, scale=0.1):
        return (scale * jax.random.normal(k, shape)).astype(jnp.float32)

    params = {
        # attention projections, weights stored as (in, out)
        "wq": w(ks[0], (D, D)), "bq": w(ks[1], (1, D)),
        "wk": w(ks[2], (D, D)), "bk": w(ks[3], (1, D)),
        "wv": w(ks[4], (D, D)), "bv": w(ks[5], (1, D)),
        "wo": w(ks[6], (D, D)), "bo": w(ks[7], (1, D)),
        "ln1_g": jnp.ones((1, D), jnp.float32) + w(ks[8], (1, D), 0.01),
        "ln1_b": w(ks[9], (1, D), 0.01),
        # feedforward
        "w1": w(ks[10], (D, F)), "b1": w(ks[11], (1, F)),
        "w2": w(ks[12], (F, D)), "b2": w(ks[13], (1, D)),
        "ln2_g": jnp.ones((1, D), jnp.float32) + w(ks[14], (1, D), 0.01),
        "ln2_b": w(ks[15], (1, D), 0.01),
    }

    x = jax.random.normal(jax.random.PRNGKey(42), (B, L, D), dtype=jnp.float32)

    out = transformer_encoder_layer(x, params, head_num=H)
    out = jax.block_until_ready(out)

    ref = jax.block_until_ready(_reference(x, params, H))
    assert out.shape == (B, L, D)
    # bf16 matmul operands (f32 accumulation) + approx reciprocal vs f32 reference
    assert np.allclose(np.asarray(out), np.asarray(ref), atol=2e-2, rtol=2e-2)

    print("KERNEL_OK")
</pallas_src>

<mosaic_0001>
module attributes {stable_mosaic.version = 11 : i64} {
  func.func @encoder_layer_kernel(%arg0: i32, %arg1: memref<2x8x32xf32, #tpu.memory_space<vmem>>, %arg2: memref<32x96xbf16, #tpu.memory_space<vmem>>, %arg3: memref<1x96xf32, #tpu.memory_space<vmem>>, %arg4: memref<32x32xbf16, #tpu.memory_space<vmem>>, %arg5: memref<1x32xf32, #tpu.memory_space<vmem>>, %arg6: memref<1x32xf32, #tpu.memory_space<vmem>>, %arg7: memref<1x32xf32, #tpu.memory_space<vmem>>, %arg8: memref<32x64xbf16, #tpu.memory_space<vmem>>, %arg9: memref<1x64xf32, #tpu.memory_space<vmem>>, %arg10: memref<64x32xbf16, #tpu.memory_space<vmem>>, %arg11: memref<1x32xf32, #tpu.memory_space<vmem>>, %arg12: memref<1x32xf32, #tpu.memory_space<vmem>>, %arg13: memref<1x32xf32, #tpu.memory_space<vmem>>, %arg14: memref<2x8x32xf32, #tpu.memory_space<vmem>>) attributes {dimension_semantics = [#tpu.dimension_semantics<parallel>], iteration_bounds = array<i64: 1>, scalar_prefetch = 0 : i64, scratch_operands = 0 : i64, tpu.core_type = #tpu.core_type<tc>, window_params = [{transform_indices = @transform_0, window_bounds = array<i64: 2, 8, 32>}, {pipeline_mode = #tpu.pipeline_mode<synchronous>, transform_indices = @transform_1, window_bounds = array<i64: 32, 96>}, {pipeline_mode = #tpu.pipeline_mode<synchronous>, transform_indices = @transform_2, window_bounds = array<i64: 1, 96>}, {pipeline_mode = #tpu.pipeline_mode<synchronous>, transform_indices = @transform_3, window_bounds = array<i64: 32, 32>}, {pipeline_mode = #tpu.pipeline_mode<synchronous>, transform_indices = @transform_4, window_bounds = array<i64: 1, 32>}, {pipeline_mode = #tpu.pipeline_mode<synchronous>, transform_indices = @transform_5, window_bounds = array<i64: 1, 32>}, {pipeline_mode = #tpu.pipeline_mode<synchronous>, transform_indices = @transform_6, window_bounds = array<i64: 1, 32>}, {pipeline_mode = #tpu.pipeline_mode<synchronous>, transform_indices = @transform_7, window_bounds = array<i64: 32, 64>}, {pipeline_mode = #tpu.pipeline_mode<synchronous>, transform_indices = @transform_8, window_bounds = array<i64: 1, 64>}, {pipeline_mode = #tpu.pipeline_mode<synchronous>, transform_indices = @transform_9, window_bounds = array<i64: 64, 32>}, {pipeline_mode = #tpu.pipeline_mode<synchronous>, transform_indices = @transform_10, window_bounds = array<i64: 1, 32>}, {pipeline_mode = #tpu.pipeline_mode<synchronous>, transform_indices = @transform_11, window_bounds = array<i64: 1, 32>}, {pipeline_mode = #tpu.pipeline_mode<synchronous>, transform_indices = @transform_12, window_bounds = array<i64: 1, 32>}, {transform_indices = @transform_13, window_bounds = array<i64: 2, 8, 32>}]} {
    %c0 = arith.constant 0 : index
    %c0_0 = arith.constant 0 : index
    %c0_1 = arith.constant 0 : index
    %0 = vector.load %arg1[%c0, %c0_0, %c0_1] : memref<2x8x32xf32, #tpu.memory_space<vmem>>, vector<2x8x32xf32>
    %1 = vector.shape_cast %0 : vector<2x8x32xf32> to vector<16x32xf32>
    %2 = arith.truncf %1 : vector<16x32xf32> to vector<16x32xbf16>
    %c0_2 = arith.constant 0 : index
    %c0_3 = arith.constant 0 : index
    %3 = vector.load %arg2[%c0_2, %c0_3] : memref<32x96xbf16, #tpu.memory_space<vmem>>, vector<32x96xbf16>
    %cst = arith.constant dense<0.000000e+00> : vector<16x96xf32>
    %4 = tpu.matmul %2, %3, %cst {dimension_numbers = #tpu.dot_dimension_numbers<[1], [0], [0], [1], [0, 0, 1, 1], [], []>} : vector<16x32xbf16>, vector<32x96xbf16>, vector<16x96xf32> -> vector<16x96xf32>
    %c0_4 = arith.constant 0 : index
    %c0_5 = arith.constant 0 : index
    %5 = vector.load %arg3[%c0_4, %c0_5] : memref<1x96xf32, #tpu.memory_space<vmem>>, vector<1x96xf32>
    %6 = vector.broadcast %5 : vector<1x96xf32> to vector<16x96xf32>
    %7 = arith.addf %4, %6 : vector<16x96xf32>
    %8 = vector.extract_strided_slice %7 {offsets = [0, 0], sizes = [16, 8], strides = [1, 1]} : vector<16x96xf32> to vector<16x8xf32>
    %9 = vector.shape_cast %8 : vector<16x8xf32> to vector<2x8x8xf32>
    %10 = arith.truncf %9 : vector<2x8x8xf32> to vector<2x8x8xbf16>
    %11 = vector.extract_strided_slice %7 {offsets = [0, 32], sizes = [16, 8], strides = [1, 1]} : vector<16x96xf32> to vector<16x8xf32>
    %12 = vector.shape_cast %11 : vector<16x8xf32> to vector<2x8x8xf32>
    %13 = arith.truncf %12 : vector<2x8x8xf32> to vector<2x8x8xbf16>
    %14 = vector.extract_strided_slice %7 {offsets = [0, 64], sizes = [16, 8], strides = [1, 1]} : vector<16x96xf32> to vector<16x8xf32>
    %15 = vector.shape_cast %14 : vector<16x8xf32> to vector<2x8x8xf32>
    %16 = arith.truncf %15 : vector<2x8x8xf32> to vector<2x8x8xbf16>
    "tpu.trace_start"() <{level = 10 : i32, message = "bqd,bkd->bqk"}> : () -> ()
    %cst_6 = arith.constant dense<0.000000e+00> : vector<2x8x8xf32>
    %17 = tpu.matmul %10, %13, %cst_6 {dimension_numbers = #tpu.dot_dimension_numbers<[2], [2], [1], [1], [0, 0, 0, 1, 1, 1], [0], [0]>} : vector<2x8x8xbf16>, vector<2x8x8xbf16>, vector<2x8x8xf32> -> vector<2x8x8xf32>
    "tpu.trace_stop"() : () -> ()
    %cst_7 = arith.constant dense<0xFF800000> : vector<2x8xf32>
    %18 = vector.multi_reduction <maximumf>, %17, %cst_7 [2] : vector<2x8x8xf32> to vector<2x8xf32>
    %19 = vector.shape_cast %18 : vector<2x8xf32> to vector<2x8x1xf32>
    %20 = vector.broadcast %19 : vector<2x8x1xf32> to vector<2x8x8xf32>
    %21 = arith.subf %17, %20 : vector<2x8x8xf32>
    %22 = math.exp %21 : vector<2x8x8xf32>
    %cst_8 = arith.constant dense<0.000000e+00> : vector<2x8xf32>
    %23 = vector.multi_reduction <add>, %22, %cst_8 [2] : vector<2x8x8xf32> to vector<2x8xf32>
    %24 = vector.shape_cast %23 : vector<2x8xf32> to vector<2x8x1xf32>
    %25 = tpu.reciprocal %24 {approx = true} : vector<2x8x1xf32> -> vector<2x8x1xf32>
    %26 = arith.truncf %22 : vector<2x8x8xf32> to vector<2x8x8xbf16>
    "tpu.trace_start"() <{level = 10 : i32, message = "bqk,bkd->bqd"}> : () -> ()
    %cst_9 = arith.constant dense<0.000000e+00> : vector<2x8x8xf32>
    %27 = tpu.matmul %26, %16, %cst_9 {dimension_numbers = #tpu.dot_dimension_numbers<[2], [1], [1], [2], [0, 0, 0, 1, 1, 2], [0], [0]>} : vector<2x8x8xbf16>, vector<2x8x8xbf16>, vector<2x8x8xf32> -> vector<2x8x8xf32>
    "tpu.trace_stop"() : () -> ()
    %28 = vector.broadcast %25 : vector<2x8x1xf32> to vector<2x8x8xf32>
    %29 = arith.mulf %27, %28 : vector<2x8x8xf32>
    %30 = vector.extract_strided_slice %7 {offsets = [0, 8], sizes = [16, 8], strides = [1, 1]} : vector<16x96xf32> to vector<16x8xf32>
    %31 = vector.shape_cast %30 : vector<16x8xf32> to vector<2x8x8xf32>
    %32 = arith.truncf %31 : vector<2x8x8xf32> to vector<2x8x8xbf16>
    %33 = vector.extract_strided_slice %7 {offsets = [0, 40], sizes = [16, 8], strides = [1, 1]} : vector<16x96xf32> to vector<16x8xf32>
    %34 = vector.shape_cast %33 : vector<16x8xf32> to vector<2x8x8xf32>
    %35 = arith.truncf %34 : vector<2x8x8xf32> to vector<2x8x8xbf16>
    %36 = vector.extract_strided_slice %7 {offsets = [0, 72], sizes = [16, 8], strides = [1, 1]} : vector<16x96xf32> to vector<16x8xf32>
    %37 = vector.shape_cast %36 : vector<16x8xf32> to vector<2x8x8xf32>
    %38 = arith.truncf %37 : vector<2x8x8xf32> to vector<2x8x8xbf16>
    "tpu.trace_start"() <{level = 10 : i32, message = "bqd,bkd->bqk"}> : () -> ()
    %cst_10 = arith.constant dense<0.000000e+00> : vector<2x8x8xf32>
    %39 = tpu.matmul %32, %35, %cst_10 {dimension_numbers = #tpu.dot_dimension_numbers<[2], [2], [1], [1], [0, 0, 0, 1, 1, 1], [0], [0]>} : vector<2x8x8xbf16>, vector<2x8x8xbf16>, vector<2x8x8xf32> -> vector<2x8x8xf32>
    "tpu.trace_stop"() : () -> ()
    %cst_11 = arith.constant dense<0xFF800000> : vector<2x8xf32>
    %40 = vector.multi_reduction <maximumf>, %39, %cst_11 [2] : vector<2x8x8xf32> to vector<2x8xf32>
    %41 = vector.shape_cast %40 : vector<2x8xf32> to vector<2x8x1xf32>
    %42 = vector.broadcast %41 : vector<2x8x1xf32> to vector<2x8x8xf32>
    %43 = arith.subf %39, %42 : vector<2x8x8xf32>
    %44 = math.exp %43 : vector<2x8x8xf32>
    %cst_12 = arith.constant dense<0.000000e+00> : vector<2x8xf32>
    %45 = vector.multi_reduction <add>, %44, %cst_12 [2] : vector<2x8x8xf32> to vector<2x8xf32>
    %46 = vector.shape_cast %45 : vector<2x8xf32> to vector<2x8x1xf32>
    %47 = tpu.reciprocal %46 {approx = true} : vector<2x8x1xf32> -> vector<2x8x1xf32>
    %48 = arith.truncf %44 : vector<2x8x8xf32> to vector<2x8x8xbf16>
    "tpu.trace_start"() <{level = 10 : i32, message = "bqk,bkd->bqd"}> : () -> ()
    %cst_13 = arith.constant dense<0.000000e+00> : vector<2x8x8xf32>
    %49 = tpu.matmul %48, %38, %cst_13 {dimension_numbers = #tpu.dot_dimension_numbers<[2], [1], [1], [2], [0, 0, 0, 1, 1, 2], [0], [0]>} : vector<2x8x8xbf16>, vector<2x8x8xbf16>, vector<2x8x8xf32> -> vector<2x8x8xf32>
    "tpu.trace_stop"() : () -> ()
    %50 = vector.broadcast %47 : vector<2x8x1xf32> to vector<2x8x8xf32>
    %51 = arith.mulf %49, %50 : vector<2x8x8xf32>
    %52 = vector.extract_strided_slice %7 {offsets = [0, 16], sizes = [16, 8], strides = [1, 1]} : vector<16x96xf32> to vector<16x8xf32>
    %53 = vector.shape_cast %52 : vector<16x8xf32> to vector<2x8x8xf32>
    %54 = arith.truncf %53 : vector<2x8x8xf32> to vector<2x8x8xbf16>
    %55 = vector.extract_strided_slice %7 {offsets = [0, 48], sizes = [16, 8], strides = [1, 1]} : vector<16x96xf32> to vector<16x8xf32>
    %56 = vector.shape_cast %55 : vector<16x8xf32> to vector<2x8x8xf32>
    %57 = arith.truncf %56 : vector<2x8x8xf32> to vector<2x8x8xbf16>
    %58 = vector.extract_strided_slice %7 {offsets = [0, 80], sizes = [16, 8], strides = [1, 1]} : vector<16x96xf32> to vector<16x8xf32>
    %59 = vector.shape_cast %58 : vector<16x8xf32> to vector<2x8x8xf32>
    %60 = arith.truncf %59 : vector<2x8x8xf32> to vector<2x8x8xbf16>
    "tpu.trace_start"() <{level = 10 : i32, message = "bqd,bkd->bqk"}> : () -> ()
    %cst_14 = arith.constant dense<0.000000e+00> : vector<2x8x8xf32>
    %61 = tpu.matmul %54, %57, %cst_14 {dimension_numbers = #tpu.dot_dimension_numbers<[2], [2], [1], [1], [0, 0, 0, 1, 1, 1], [0], [0]>} : vector<2x8x8xbf16>, vector<2x8x8xbf16>, vector<2x8x8xf32> -> vector<2x8x8xf32>
    "tpu.trace_stop"() : () -> ()
    %cst_15 = arith.constant dense<0xFF800000> : vector<2x8xf32>
    %62 = vector.multi_reduction <maximumf>, %61, %cst_15 [2] : vector<2x8x8xf32> to vector<2x8xf32>
    %63 = vector.shape_cast %62 : vector<2x8xf32> to vector<2x8x1xf32>
    %64 = vector.broadcast %63 : vector<2x8x1xf32> to vector<2x8x8xf32>
    %65 = arith.subf %61, %64 : vector<2x8x8xf32>
    %66 = math.exp %65 : vector<2x8x8xf32>
    %cst_16 = arith.constant dense<0.000000e+00> : vector<2x8xf32>
    %67 = vector.multi_reduction <add>, %66, %cst_16 [2] : vector<2x8x8xf32> to vector<2x8xf32>
    %68 = vector.shape_cast %67 : vector<2x8xf32> to vector<2x8x1xf32>
    %69 = tpu.reciprocal %68 {approx = true} : vector<2x8x1xf32> -> vector<2x8x1xf32>
    %70 = arith.truncf %66 : vector<2x8x8xf32> to vector<2x8x8xbf16>
    "tpu.trace_start"() <{level = 10 : i32, message = "bqk,bkd->bqd"}> : () -> ()
    %cst_17 = arith.constant dense<0.000000e+00> : vector<2x8x8xf32>
    %71 = tpu.matmul %70, %60, %cst_17 {dimension_numbers = #tpu.dot_dimension_numbers<[2], [1], [1], [2], [0, 0, 0, 1, 1, 2], [0], [0]>} : vector<2x8x8xbf16>, vector<2x8x8xbf16>, vector<2x8x8xf32> -> vector<2x8x8xf32>
    "tpu.trace_stop"() : () -> ()
    %72 = vector.broadcast %69 : vector<2x8x1xf32> to vector<2x8x8xf32>
    %73 = arith.mulf %71, %72 : vector<2x8x8xf32>
    %74 = vector.extract_strided_slice %7 {offsets = [0, 24], sizes = [16, 8], strides = [1, 1]} : vector<16x96xf32> to vector<16x8xf32>
    %75 = vector.shape_cast %74 : vector<16x8xf32> to vector<2x8x8xf32>
    %76 = arith.truncf %75 : vector<2x8x8xf32> to vector<2x8x8xbf16>
    %77 = vector.extract_strided_slice %7 {offsets = [0, 56], sizes = [16, 8], strides = [1, 1]} : vector<16x96xf32> to vector<16x8xf32>
    %78 = vector.shape_cast %77 : vector<16x8xf32> to vector<2x8x8xf32>
    %79 = arith.truncf %78 : vector<2x8x8xf32> to vector<2x8x8xbf16>
    %80 = vector.extract_strided_slice %7 {offsets = [0, 88], sizes = [16, 8], strides = [1, 1]} : vector<16x96xf32> to vector<16x8xf32>
    %81 = vector.shape_cast %80 : vector<16x8xf32> to vector<2x8x8xf32>
    %82 = arith.truncf %81 : vector<2x8x8xf32> to vector<2x8x8xbf16>
    "tpu.trace_start"() <{level = 10 : i32, message = "bqd,bkd->bqk"}> : () -> ()
    %cst_18 = arith.constant dense<0.000000e+00> : vector<2x8x8xf32>
    %83 = tpu.matmul %76, %79, %cst_18 {dimension_numbers = #tpu.dot_dimension_numbers<[2], [2], [1], [1], [0, 0, 0, 1, 1, 1], [0], [0]>} : vector<2x8x8xbf16>, vector<2x8x8xbf16>, vector<2x8x8xf32> -> vector<2x8x8xf32>
    "tpu.trace_stop"() : () -> ()
    %cst_19 = arith.constant dense<0xFF800000> : vector<2x8xf32>
    %84 = vector.multi_reduction <maximumf>, %83, %cst_19 [2] : vector<2x8x8xf32> to vector<2x8xf32>
    %85 = vector.shape_cast %84 : vector<2x8xf32> to vector<2x8x1xf32>
    %86 = vector.broadcast %85 : vector<2x8x1xf32> to vector<2x8x8xf32>
    %87 = arith.subf %83, %86 : vector<2x8x8xf32>
    %88 = math.exp %87 : vector<2x8x8xf32>
    %cst_20 = arith.constant dense<0.000000e+00> : vector<2x8xf32>
    %89 = vector.multi_reduction <add>, %88, %cst_20 [2] : vector<2x8x8xf32> to vector<2x8xf32>
    %90 = vector.shape_cast %89 : vector<2x8xf32> to vector<2x8x1xf32>
    %91 = tpu.reciprocal %90 {approx = true} : vector<2x8x1xf32> -> vector<2x8x1xf32>
    %92 = arith.truncf %88 : vector<2x8x8xf32> to vector<2x8x8xbf16>
    "tpu.trace_start"() <{level = 10 : i32, message = "bqk,bkd->bqd"}> : () -> ()
    %cst_21 = arith.constant dense<0.000000e+00> : vector<2x8x8xf32>
    %93 = tpu.matmul %92, %82, %cst_21 {dimension_numbers = #tpu.dot_dimension_numbers<[2], [1], [1], [2], [0, 0, 0, 1, 1, 2], [0], [0]>} : vector<2x8x8xbf16>, vector<2x8x8xbf16>, vector<2x8x8xf32> -> vector<2x8x8xf32>
    "tpu.trace_stop"() : () -> ()
    %94 = vector.broadcast %91 : vector<2x8x1xf32> to vector<2x8x8xf32>
    %95 = arith.mulf %93, %94 : vector<2x8x8xf32>
    %96 = tpu.concatenate %29, %51, %73, %95 in 2 : vector<2x8x8xf32>, vector<2x8x8xf32>, vector<2x8x8xf32>, vector<2x8x8xf32> -> vector<2x8x32xf32>
    %97 = vector.shape_cast %96 : vector<2x8x32xf32> to vector<16x32xf32>
    %98 = arith.truncf %97 : vector<16x32xf32> to vector<16x32xbf16>
    %c0_22 = arith.constant 0 : index
    %c0_23 = arith.constant 0 : index
    %99 = vector.load %arg4[%c0_22, %c0_23] : memref<32x32xbf16, #tpu.memory_space<vmem>>, vector<32x32xbf16>
    %cst_24 = arith.constant dense<0.000000e+00> : vector<16x32xf32>
    %100 = tpu.matmul %98, %99, %cst_24 {dimension_numbers = #tpu.dot_dimension_numbers<[1], [0], [0], [1], [0, 0, 1, 1], [], []>} : vector<16x32xbf16>, vector<32x32xbf16>, vector<16x32xf32> -> vector<16x32xf32>
    %c0_25 = arith.constant 0 : index
    %c0_26 = arith.constant 0 : index
    %101 = vector.load %arg5[%c0_25, %c0_26] : memref<1x32xf32, #tpu.memory_space<vmem>>, vector<1x32xf32>
    %102 = vector.broadcast %101 : vector<1x32xf32> to vector<16x32xf32>
    %103 = arith.addf %100, %102 : vector<16x32xf32>
    %104 = arith.addf %103, %1 : vector<16x32xf32>
    %cst_27 = arith.constant dense<0.000000e+00> : vector<16xf32>
    %105 = vector.multi_reduction <add>, %104, %cst_27 [1] : vector<16x32xf32> to vector<16xf32>
    %106 = vector.shape_cast %105 : vector<16xf32> to vector<16x1xf32>
    %cst_28 = arith.constant 3.200000e+01 : f32
    %107 = vector.broadcast %cst_28 : f32 to vector<16x1xf32>
    %108 = arith.divf %106, %107 : vector<16x1xf32>
    %109 = arith.mulf %104, %104 : vector<16x32xf32>
    %cst_29 = arith.constant dense<0.000000e+00> : vector<16xf32>
    %110 = vector.multi_reduction <add>, %109, %cst_29 [1] : vector<16x32xf32> to vector<16xf32>
    %111 = vector.shape_cast %110 : vector<16xf32> to vector<16x1xf32>
    %cst_30 = arith.constant 3.200000e+01 : f32
    %112 = vector.broadcast %cst_30 : f32 to vector<16x1xf32>
    %113 = arith.divf %111, %112 : vector<16x1xf32>
    %114 = arith.mulf %108, %108 : vector<16x1xf32>
    %115 = arith.subf %113, %114 : vector<16x1xf32>
    %116 = vector.broadcast %108 : vector<16x1xf32> to vector<16x32xf32>
    %117 = arith.subf %104, %116 : vector<16x32xf32>
    %cst_31 = arith.constant 9.99999974E-6 : f32
    %118 = vector.broadcast %cst_31 : f32 to vector<16x1xf32>
    %119 = arith.addf %115, %118 : vector<16x1xf32>
    %120 = math.rsqrt %119 : vector<16x1xf32>
    %121 = vector.broadcast %120 : vector<16x1xf32> to vector<16x32xf32>
    %122 = arith.mulf %117, %121 : vector<16x32xf32>
    %c0_32 = arith.constant 0 : index
    %c0_33 = arith.constant 0 : index
    %123 = vector.load %arg6[%c0_32, %c0_33] : memref<1x32xf32, #tpu.memory_space<vmem>>, vector<1x32xf32>
    %124 = vector.broadcast %123 : vector<1x32xf32> to vector<16x32xf32>
    %125 = arith.mulf %122, %124 : vector<16x32xf32>
    %c0_34 = arith.constant 0 : index
    %c0_35 = arith.constant 0 : index
    %126 = vector.load %arg7[%c0_34, %c0_35] : memref<1x32xf32, #tpu.memory_space<vmem>>, vector<1x32xf32>
    %127 = vector.broadcast %126 : vector<1x32xf32> to vector<16x32xf32>
    %128 = arith.addf %125, %127 : vector<16x32xf32>
    %129 = arith.truncf %128 : vector<16x32xf32> to vector<16x32xbf16>
    %c0_36 = arith.constant 0 : index
    %c0_37 = arith.constant 0 : index
    %130 = vector.load %arg8[%c0_36, %c0_37] : memref<32x64xbf16, #tpu.memory_space<vmem>>, vector<32x64xbf16>
    %cst_38 = arith.constant dense<0.000000e+00> : vector<16x64xf32>
    %131 = tpu.matmul %129, %130, %cst_38 {dimension_numbers = #tpu.dot_dimension_numbers<[1], [0], [0], [1], [0, 0, 1, 1], [], []>} : vector<16x32xbf16>, vector<32x64xbf16>, vector<16x64xf32> -> vector<16x64xf32>
    %c0_39 = arith.constant 0 : index
    %c0_40 = arith.constant 0 : index
    %132 = vector.load %arg9[%c0_39, %c0_40] : memref<1x64xf32, #tpu.memory_space<vmem>>, vector<1x64xf32>
    %133 = vector.broadcast %132 : vector<1x64xf32> to vector<16x64xf32>
    %134 = arith.addf %131, %133 : vector<16x64xf32>
    %cst_41 = arith.constant 0.000000e+00 : f32
    %135 = vector.broadcast %cst_41 : f32 to vector<16x64xf32>
    %136 = arith.maximumf %134, %135 : vector<16x64xf32>
    %137 = arith.truncf %136 : vector<16x64xf32> to vector<16x64xbf16>
    %c0_42 = arith.constant 0 : index
    %c0_43 = arith.constant 0 : index
    %138 = vector.load %arg10[%c0_42, %c0_43] : memref<64x32xbf16, #tpu.memory_space<vmem>>, vector<64x32xbf16>
    %cst_44 = arith.constant dense<0.000000e+00> : vector<16x32xf32>
    %139 = tpu.matmul %137, %138, %cst_44 {dimension_numbers = #tpu.dot_dimension_numbers<[1], [0], [0], [1], [0, 0, 1, 1], [], []>} : vector<16x64xbf16>, vector<64x32xbf16>, vector<16x32xf32> -> vector<16x32xf32>
    %c0_45 = arith.constant 0 : index
    %c0_46 = arith.constant 0 : index
    %140 = vector.load %arg11[%c0_45, %c0_46] : memref<1x32xf32, #tpu.memory_space<vmem>>, vector<1x32xf32>
    %141 = vector.broadcast %140 : vector<1x32xf32> to vector<16x32xf32>
    %142 = arith.addf %139, %141 : vector<16x32xf32>
    %cst_47 = arith.constant 0.000000e+00 : f32
    %143 = vector.broadcast %cst_47 : f32 to vector<16x32xf32>
    %144 = arith.maximumf %142, %143 : vector<16x32xf32>
    %145 = arith.addf %144, %128 : vector<16x32xf32>
    %cst_48 = arith.constant dense<0.000000e+00> : vector<16xf32>
    %146 = vector.multi_reduction <add>, %145, %cst_48 [1] : vector<16x32xf32> to vector<16xf32>
    %147 = vector.shape_cast %146 : vector<16xf32> to vector<16x1xf32>
    %cst_49 = arith.constant 3.200000e+01 : f32
    %148 = vector.broadcast %cst_49 : f32 to vector<16x1xf32>
    %149 = arith.divf %147, %148 : vector<16x1xf32>
    %150 = arith.mulf %145, %145 : vector<16x32xf32>
    %cst_50 = arith.constant dense<0.000000e+00> : vector<16xf32>
    %151 = vector.multi_reduction <add>, %150, %cst_50 [1] : vector<16x32xf32> to vector<16xf32>
    %152 = vector.shape_cast %151 : vector<16xf32> to vector<16x1xf32>
    %cst_51 = arith.constant 3.200000e+01 : f32
    %153 = vector.broadcast %cst_51 : f32 to vector<16x1xf32>
    %154 = arith.divf %152, %153 : vector<16x1xf32>
    %155 = arith.mulf %149, %149 : vector<16x1xf32>
    %156 = arith.subf %154, %155 : vector<16x1xf32>
    %157 = vector.broadcast %149 : vector<16x1xf32> to vector<16x32xf32>
    %158 = arith.subf %145, %157 : vector<16x32xf32>
    %cst_52 = arith.constant 9.99999974E-6 : f32
    %159 = vector.broadcast %cst_52 : f32 to vector<16x1xf32>
    %160 = arith.addf %156, %159 : vector<16x1xf32>
    %161 = math.rsqrt %160 : vector<16x1xf32>
    %162 = vector.broadcast %161 : vector<16x1xf32> to vector<16x32xf32>
    %163 = arith.mulf %158, %162 : vector<16x32xf32>
    %c0_53 = arith.constant 0 : index
    %c0_54 = arith.constant 0 : index
    %164 = vector.load %arg12[%c0_53, %c0_54] : memref<1x32xf32, #tpu.memory_space<vmem>>, vector<1x32xf32>
    %165 = vector.broadcast %164 : vector<1x32xf32> to vector<16x32xf32>
    %166 = arith.mulf %163, %165 : vector<16x32xf32>
    %c0_55 = arith.constant 0 : index
    %c0_56 = arith.constant 0 : index
    %167 = vector.load %arg13[%c0_55, %c0_56] : memref<1x32xf32, #tpu.memory_space<vmem>>, vector<1x32xf32>
    %168 = vector.broadcast %167 : vector<1x32xf32> to vector<16x32xf32>
    %169 = arith.addf %166, %168 : vector<16x32xf32>
    %170 = vector.shape_cast %169 : vector<16x32xf32> to vector<2x8x32xf32>
    %c0_57 = arith.constant 0 : index
    %c0_58 = arith.constant 0 : index
    %c0_59 = arith.constant 0 : index
    %171 = vector.load %arg14[%c0_57, %c0_58, %c0_59] : memref<2x8x32xf32, #tpu.memory_space<vmem>>, vector<2x8x32xf32>
    tpu.vector_store %arg14[%c0_57, %c0_58, %c0_59], %170 {strides = array<i32>} : memref<2x8x32xf32, #tpu.memory_space<vmem>>, vector<2x8x32xf32>,
    return
  }
  func.func @transform_0(%arg0: i32) -> (i32, i32, i32) {
    %c0_i32 = arith.constant 0 : i32
    %c0_i32_0 = arith.constant 0 : i32
    %c0_i32_1 = arith.constant 0 : i32
    return %arg0, %c0_i32, %c0_i32_0 : i32, i32, i32
  }
  func.func @transform_1(%arg0: i32) -> (i32, i32) {
    %c0_i32 = arith.constant 0 : i32
    %c0_i32_0 = arith.constant 0 : i32
    %c0_i32_1 = arith.constant 0 : i32
    return %c0_i32, %c0_i32_0 : i32, i32
  }
  func.func @transform_2(%arg0: i32) -> (i32, i32) {
    %c0_i32 = arith.constant 0 : i32
    %c0_i32_0 = arith.constant 0 : i32
    %c0_i32_1 = arith.constant 0 : i32
    return %c0_i32, %c0_i32_0 : i32, i32
  }
  func.func @transform_3(%arg0: i32) -> (i32, i32) {
    %c0_i32 = arith.constant 0 : i32
    %c0_i32_0 = arith.constant 0 : i32
    %c0_i32_1 = arith.constant 0 : i32
    return %c0_i32, %c0_i32_0 : i32, i32
  }
  func.func @transform_4(%arg0: i32) -> (i32, i32) {
    %c0_i32 = arith.constant 0 : i32
    %c0_i32_0 = arith.constant 0 : i32
    %c0_i32_1 = arith.constant 0 : i32
    return %c0_i32, %c0_i32_0 : i32, i32
  }
  func.func @transform_5(%arg0: i32) -> (i32, i32) {
    %c0_i32 = arith.constant 0 : i32
    %c0_i32_0 = arith.constant 0 : i32
    %c0_i32_1 = arith.constant 0 : i32
    return %c0_i32, %c0_i32_0 : i32, i32
  }
  func.func @transform_6(%arg0: i32) -> (i32, i32) {
    %c0_i32 = arith.constant 0 : i32
    %c0_i32_0 = arith.constant 0 : i32
    %c0_i32_1 = arith.constant 0 : i32
    return %c0_i32, %c0_i32_0 : i32, i32
  }
  func.func @transform_7(%arg0: i32) -> (i32, i32) {
    %c0_i32 = arith.constant 0 : i32
    %c0_i32_0 = arith.constant 0 : i32
    %c0_i32_1 = arith.constant 0 : i32
    return %c0_i32, %c0_i32_0 : i32, i32
  }
  func.func @transform_8(%arg0: i32) -> (i32, i32) {
    %c0_i32 = arith.constant 0 : i32
    %c0_i32_0 = arith.constant 0 : i32
    %c0_i32_1 = arith.constant 0 : i32
    return %c0_i32, %c0_i32_0 : i32, i32
  }
  func.func @transform_9(%arg0: i32) -> (i32, i32) {
    %c0_i32 = arith.constant 0 : i32
    %c0_i32_0 = arith.constant 0 : i32
    %c0_i32_1 = arith.constant 0 : i32
    return %c0_i32, %c0_i32_0 : i32, i32
  }
  func.func @transform_10(%arg0: i32) -> (i32, i32) {
    %c0_i32 = arith.constant 0 : i32
    %c0_i32_0 = arith.constant 0 : i32
    %c0_i32_1 = arith.constant 0 : i32
    return %c0_i32, %c0_i32_0 : i32, i32
  }
  func.func @transform_11(%arg0: i32) -> (i32, i32) {
    %c0_i32 = arith.constant 0 : i32
    %c0_i32_0 = arith.constant 0 : i32
    %c0_i32_1 = arith.constant 0 : i32
    return %c0_i32, %c0_i32_0 : i32, i32
  }
  func.func @transform_12(%arg0: i32) -> (i32, i32) {
    %c0_i32 = arith.constant 0 : i32
    %c0_i32_0 = arith.constant 0 : i32
    %c0_i32_1 = arith.constant 0 : i32
    return %c0_i32, %c0_i32_0 : i32, i32
  }
  func.func @transform_13(%arg0: i32) -> (i32, i32, i32) {
    %c0_i32 = arith.constant 0 : i32
    %c0_i32_0 = arith.constant 0 : i32
    %c0_i32_1 = arith.constant 0 : i32
    return %arg0, %c0_i32, %c0_i32_0 : i32, i32, i32
  }
}

</mosaic_0001>

<bundles_post_ra>
// kernel: tpu_custom_call.1
= control target key start
LH: loop header
LB: loop body
LE: loop exit
PB: predicated region body
PF: predicated region fallthrough
CT: control target
= control target key end

     0   :  { %18 = vsyncpa [#allocation3], 0  ;;  %s2118_s0 = inlined_call_operand.vmem [shape: f32[2,8,32], index: 0, kind: input, shape index: {}]   ;;  %s2119_s1 = inlined_call_operand.vmem [shape: bf16[32,96], index: 1, kind: input, shape index: {}]   ;;  %s2120_s2 = inlined_call_operand.vmem [shape: f32[1,96], index: 2, kind: input, shape index: {}]   ;;  %s2121_s3 = inlined_call_operand.vmem [shape: bf16[32,32], index: 3, kind: input, shape index: {}]   ;;  %s2122_s4 = inlined_call_operand.vmem [shape: f32[1,32], index: 4, kind: input, shape index: {}]   ;;  %s2123_s5 = inlined_call_operand.vmem [shape: f32[1,32], index: 5, kind: input, shape index: {}]   ;;  %s2124_s6 = inlined_call_operand.vmem [shape: f32[1,32], index: 6, kind: input, shape index: {}]   ;;  %s2125_s7 = inlined_call_operand.hbm [shape: bf16[32,64], index: 7, kind: input, shape index: {}]   ;;  %s2126_s8 = inlined_call_operand.vmem [shape: f32[1,64], index: 8, kind: input, shape index: {}]   ;;  %s2127_s9 = inlined_call_operand.vmem [shape: bf16[64,32], index: 9, kind: input, shape index: {}]   ;;  %s2128_s10 = inlined_call_operand.vmem [shape: f32[1,32], index: 10, kind: input, shape index: {}]   ;;  %s2129_s11 = inlined_call_operand.vmem [shape: f32[1,32], index: 11, kind: input, shape index: {}]   ;;  %s2130_s12 = inlined_call_operand.vmem [shape: f32[1,32], index: 12, kind: input, shape index: {}]   ;;  %s2131_s13 = inlined_call_operand.hbm [shape: f32[2,8,32], index: 13, kind: output, shape index: {}]  }
   0x1   :  { %19 = vsyncpa [#allocation4], 0  ;;  %s1739_s25 = smov [#allocation2]   ;;  %s1691_s29 = scalar_lea.hbm %s2125_s7, 256 }
   0x2   :  { %s39_s26 = sshll.u32 %s1739_s25, 4  ;;  %p1692_p0 = scmp.ne.s32.totalorder %s2125_s7, %s1691_s29  ;;  %s40_s26 = int_to_ptr.vmem [resolvable:$true] %s39_s26 }
   0x3   :  { %p1695_p1 = scmp.lt.u32.totalorder %s1691_s29, %s2125_s7 }
   0x5   :  { %p1697_p2 = pnand %p1695_p1, %p1692_p0 }
   0x7   :  { %1700 = shalt.err (!%p1697_p2)
}
   0x8   :  { %s1701_s17 = scalar_lea.vmem %s40_s26, 256  ;;  %p1706_p4 = scmp.lt.s32.totalorder %s40_s26, %s40_s26 }
   0x9   :  { %p1702_p3 = scmp.ne.s32.totalorder %s40_s26, %s1701_s17  ;;  %p1707_p5 = scmp.lt.s32.totalorder %s1701_s17, %s1701_s17 }
   0xb   :  { %p1708_p6 = por %p1707_p5, %p1706_p4 }
   0xd   :  { %p1709_p7 = pnand %p1708_p6, %p1702_p3 }
   0xf   :  { %1712 = shalt.err (!%p1709_p7)
}
  0x10   :  { %s1740_s18 = smov 64   ;;  %s1741_s19 = smov 4  }
  0x11   :  { %45 = dma.hbm_to_vmem [thread:$0]  %s2125_s7, 256, %s40_s26, [#allocation3], %s1740_s18, %s1740_s18, %s1741_s19  }
  0x12   :  { %1735 = dma.done.wait [#allocation3], 256  }
  0x13   :  { %1736 = vsyncadd [#allocation3], 4294967040  ;;  %v1742_v0 = vmov 0.0   ;;  %vm1743_vm0 = vmmov 0   ;;  %v1641_v1 = vld [vmem:[%s2119_s1] sm:$0xff]   ;;  %v1642_v2 = vld [vmem:[%s2119_s1 + $0x8] sm:$0xff]  }
  0x14   :  { %1474 = vmatprep.subr.bf16.mxu0 %v1742_v0  ;;  %1478 = vmatprep.mubr.msk.bf16.mxu0 %vm1743_vm0, %v1742_v0  ;;  %v1858_v3 = vld [vmem:[%s2118_s0] sm:$0xff]  ;;  %v1863_v4 = vld [vmem:[%s2118_s0 + $0x8] sm:$0xff]  ;;  %vm86_vm1 = vcmask 261120   ;;  %s1744_s0 = smov 96   ;;  %s1745_s30 = smov 88   ;;  %vm136_vm2 = vcmask 64512  }
  0x15   :  { %1482 = vmatprep.subr.bf16.mxu1 %v1742_v0  ;;  %1484 = vmatprep.mubr.msk.bf16.mxu1 %vm1743_vm0, %v1742_v0  ;;  %v62_v5 = vpack.c.bf16 %v1863_v4, %v1858_v3  ;;  %v1390_v6 = vld [vmem:[%s2120_s2] ss:$0 sm:$0xff]  ;;  %s1746_s2 = smov 120   ;;  %s1747_s14 = smov 56   ;;  %vm259_vm3 = vcmask 1043456   ;;  %vm1039_vm4 = vcmask 130048  }
  0x16   :  { %1475 = vmatpush3.bf16.msra.mxu0 %v1641_v1  ;;  %s1748_s15 = smov 80   ;;  %s1749_s16 = smov 112   ;;  %vm1042_vm5 = vcmask 195584   ;;  %vm1274_vm6 = vcmask 523264  }
  0x17   :  { %1476 = vmatprep.subr.bf16.mxu0 %v1742_v0  ;;  %s1750_s17 = smov 48   ;;  %s1752_s19 = smov 104  }
  0x18   :  { %s1753_s20 = smov 40   ;;  %s1754_s21 = smov 8  }
  0x19   :  { %s1755_s22 = smov 16   ;;  %s1756_s26 = smov 24  }
  0x1a   :  { %1477 = vmatpush3.bf16.msra.mxu0 %v1642_v2  ;;  %s1757_s23 = smov [#allocation5]  }
  0x1b   :  { %1488 = vmatprep.subr.bf16.mxu0 %v1742_v0  ;;  %s1378_s7 = sshll.u32 %s1757_s23, 4  ;;  %s1379_s7 = int_to_ptr.vmem [resolvable:$true] %s1378_s7 }
  0x1c   :  { %p1718_p9 = scmp.lt.s32.totalorder %s1379_s7, %s1379_s7 }
  0x1d   :  { %1479 = vmatmul.mubr.msk.bf16.vlgmr.msra.gmra.mrb[0].mxu0 %vm86_vm1, %v62_v5 }
  0x1e   :  { %1490 = vmatprep.mubr.msk.bf16.mxu0 %vm1743_vm0, %v1742_v0 }
  0xf0   :  { %v124_v7 = vpop.f32.mrb[0].mxu0 }
  0xf1   :  { %v125_v8 = vadd.f32 %v1390_v6, %v124_v7  ;;  %v1480_v9 = vpop.f32.mrb[1].mxu0 }
  0xf2   :  { %v127_v10 = vpop.f32.mrb[2].mxu0 }
  0xf3   :  { %v1875_v11 = vpack.c.bf16 %v125_v8, %v125_v8  ;;  %v128_v12 = vadd.f32 %v1390_v6, %v127_v10  ;;  %v1481_v13 = vpop.f32.mrb[3].mxu0 }
  0xf5   :  { %134 = vrot.lane.b32.xlu0 %v1875_v11, %s1744_s0  ;;  %v1878_v14 = vpack.c.bf16 %v128_v12, %v128_v12 }
  0xf9   :  { %184 = vrot.lane.b32.xlu0 %v1878_v14, %s1744_s0 }
  0xfd   :  { %254 = vrot.lane.b32.xlu0 %v1875_v11, %s1740_s18 }
 0x101   :  { %355 = vrot.lane.b32.xlu0 %v1875_v11, %s1745_s30 }
 0x105   :  { %405 = vrot.lane.b32.xlu0 %v1878_v14, %s1745_s30 }
 0x109   :  { %353 = vrot.lane.b32.xlu0 %v1875_v11, %s1746_s2 }
 0x10d   :  { %403 = vrot.lane.b32.xlu0 %v1878_v14, %s1746_s2 }
 0x111   :  { %475 = vrot.lane.b32.xlu0 %v1875_v11, %s1747_s14 }
 0x167   :  { %v135_v15 = vpop.permute.xlu0 %134 }
 0x168   :  { %v141_v16 = vsel %vm136_vm2, %v135_v15, 0 }
 0x169   :  { %1483 = vmatpush3.bf16.xpose.msra.mxu1 %v141_v16 }
 0x16a   :  { %1494 = vmatprep.subr.bf16.mxu1 %v1742_v0 }
 0x16b   :  { %v185_v17 = vpop.permute.xlu0 %184 }
 0x16c   :  { %v190_v18 = vsel %vm136_vm2, %v185_v17, 0 }
 0x16d   :  { %1489 = vmatpush3.bf16.xpose.msra.mxu0 %v190_v18 }
 0x16e   :  { %1500 = vmatprep.subr.bf16.mxu0 %v1742_v0 }
 0x16f   :  { %v255_v19 = vpop.permute.xlu0 %254 }
 0x170   :  { %v261_v20 = vsel %vm259_vm3, %v255_v19, 0  ;;  %1485 = vmatmul.mubr.msk.bf16.vlgmr.msra.gmra.mrb[0].mxu1 %vm136_vm2, %v1875_v11 }
 0x171   :  { %1495 = vmatpush3.bf16.msra.mxu1 %v261_v20  ;;  %1496 = vmatprep.mubr.msk.bf16.mxu1 %vm1743_vm0, %v1742_v0 }
 0x172   :  { %1506 = vmatprep.subr.bf16.mxu1 %v1742_v0 }
 0x173   :  { %v356_v31 = vpop.permute.xlu0 %355 }
 0x174   :  { %1491 = vmatmul.mubr.msk.bf16.vlgmr.msra.gmra.mrb[4].mxu0 %vm136_vm2, %v1878_v14  ;;  %v361_v45 = vsel %vm136_vm2, %v356_v31, 0 }
 0x175   :  { %1502 = vmatprep.mubr.msk.bf16.mxu0 %vm1743_vm0, %v1742_v0 }
 0x177   :  { %v406_v36 = vpop.permute.xlu0 %405 }
 0x178   :  { %v411_v48 = vsel %vm136_vm2, %v406_v36, 0 }
 0x17b   :  { %v354_v41 = vpop.permute.xlu0 %353 }
 0x17f   :  { %v404_v44 = vpop.permute.xlu0 %403 }
 0x183   :  { %v476_v49 = vpop.permute.xlu0 %475 }
 0x184   :  { %v481_v50 = vsel %vm259_vm3, %v476_v49, 0 }
 0x243   :  { %v177_v21 = vpop.f32.mrb[0].mxu1 }
 0x244   :  { %v1486_v22 = vpop.f32.mrb[1].mxu1  ;;  %v232_v23 = vsel %vm136_vm2, %v177_v21, -inf }
 0x245   :  { %233 = vmax.xlane.f32.xlu1 %v232_v23  ;;  %v180_v24 = vpop.f32.mrb[2].mxu1 }
 0x246   :  { %v1487_v25 = vpop.f32.mrb[3].mxu1 }
 0x247   :  { %v226_v26 = vpop.f32.mrb[4].mxu0 }
 0x248   :  { %v1492_v27 = vpop.f32.mrb[5].mxu0  ;;  %v235_v28 = vsel %vm136_vm2, %v226_v26, -inf }
 0x249   :  { %236 = vmax.xlane.f32.xlu1 %v235_v28  ;;  %v229_v29 = vpop.f32.mrb[6].mxu0 }
 0x24a   :  { %v1493_v30 = vpop.f32.mrb[7].mxu0 }
 0x25a   :  { %303 = vrot.lane.b32.xlu1 %v1878_v14, %s1740_s18  ;;  %s1751_s18 = smov 72  }
 0x25e   :  { %523 = vrot.lane.b32.xlu1 %v1878_v14, %s1747_s14 }
 0x2d2   :  { %v234_v32 = vpop.xlane.xlu1 %233 }
 0x2d3   :  { %v238_v33 = vsub.f32 %v177_v21, %v234_v32 }
 0x2d5   :  { %v240_v34 = vmul.f32 1.442695, %v238_v33 }
 0x2d6   :  { %v237_v35 = vpop.xlane.xlu1 %236 }
 0x2d7   :  { %1651 = vpow2.f32 %v240_v34  ;;  %v239_v37 = vsub.f32 %v226_v26, %v237_v35 }
 0x2d9   :  { %v242_v38 = vmul.f32 1.442695, %v239_v37 }
 0x2da   :  { %v304_v39 = vpop.permute.xlu1 %303 }
 0x2db   :  { %1653 = vpow2.f32 %v242_v38  ;;  %v309_v40 = vsel %vm259_vm3, %v304_v39, 0 }
 0x2dc   :  { %1501 = vmatpush3.bf16.msra.mxu0 %v309_v40 }
 0x2dd   :  { %1512 = vmatprep.subr.bf16.mxu0 %v1742_v0 }
 0x2de   :  { %v524_v51 = vpop.permute.xlu1 %523 }
 0x2df   :  { %v529_v52 = vsel %vm259_vm3, %v524_v51, 0 }
 0x2e1   :  { %v1911_v42 = vpop.eup %1651 }
 0x2e2   :  { %v252_v43 = vpack.c.bf16 %v1911_v42, %v1911_v42 }
 0x2e4   :  { %1497 = vmatmul.mubr.msk.bf16.vlgmr.msra.gmra.mrb[4].mxu1 %vm136_vm2, %v252_v43 }
 0x2e5   :  { %v1917_v46 = vpop.eup %1653  ;;  %1507 = vmatpush3.bf16.xpose.msra.mxu1 %v361_v45  ;;  %1508 = vmatprep.mubr.msk.bf16.mxu1 %vm1743_vm0, %v1742_v0 }
 0x2e6   :  { %v253_v47 = vpack.c.bf16 %v1917_v46, %v1917_v46  ;;  %1518 = vmatprep.subr.bf16.mxu1 %v1742_v0 }
 0x2e8   :  { %1503 = vmatmul.mubr.msk.bf16.vlgmr.msra.gmra.mrb[8].mxu0 %vm136_vm2, %v253_v47 }
 0x2e9   :  { %1513 = vmatpush3.bf16.xpose.msra.mxu0 %v411_v48  ;;  %1514 = vmatprep.mubr.msk.bf16.mxu0 %vm1743_vm0, %v1742_v0 }
 0x2ea   :  { %1524 = vmatprep.subr.bf16.mxu0 %v1742_v0 }
 0x2ec   :  { %1509 = vmatmul.mubr.msk.bf16.vlgmr.msra.gmra.mrb[8].mxu1 %vm136_vm2, %v354_v41 }
 0x2ed   :  { %1519 = vmatpush3.bf16.msra.mxu1 %v481_v50  ;;  %1520 = vmatprep.mubr.msk.bf16.mxu1 %vm1743_vm0, %v1742_v0 }
 0x2ee   :  { %1530 = vmatprep.subr.bf16.mxu1 %v1742_v0 }
 0x2f0   :  { %1515 = vmatmul.mubr.msk.bf16.vlgmr.msra.gmra.mrb[12].mxu0 %vm136_vm2, %v404_v44 }
 0x2f1   :  { %1525 = vmatpush3.bf16.msra.mxu0 %v529_v52  ;;  %1526 = vmatprep.mubr.msk.bf16.mxu0 %vm1743_vm0, %v1742_v0 }
 0x2f2   :  { %1536 = vmatprep.subr.bf16.mxu0 %v1742_v0 }
 0x3b7   :  { %v1939_v53 = vpop.f32.mrb[4].mxu1 }
 0x3b8   :  { %v1498_v54 = vpop.f32.mrb[5].mxu1 }
 0x3b9   :  { %v300_v55 = vpop.f32.mrb[6].mxu1 }
 0x3ba   :  { %v1499_v56 = vpop.f32.mrb[7].mxu1 }
 0x3bb   :  { %v1941_v57 = vpop.f32.mrb[8].mxu0 }
 0x3bc   :  { %v1504_v58 = vpop.f32.mrb[9].mxu0 }
 0x3bd   :  { %v348_v59 = vpop.f32.mrb[10].mxu0 }
 0x3be   :  { %v1505_v60 = vpop.f32.mrb[11].mxu0 }
 0x3bf   :  { %v397_v61 = vpop.f32.mrb[8].mxu1 }
 0x3c0   :  { %v1510_v62 = vpop.f32.mrb[9].mxu1  ;;  %v453_v63 = vsel %vm136_vm2, %v397_v61, -inf }
 0x3c1   :  { %v400_v1 = vpop.f32.mrb[10].mxu1  ;;  %454 = vmax.xlane.f32.xlu1 %v453_v63 }
 0x3c2   :  { %v1511_v2 = vpop.f32.mrb[11].mxu1 }
 0x3c3   :  { %v447_v5 = vpop.f32.mrb[12].mxu0 }
 0x3c4   :  { %v1516_v6 = vpop.f32.mrb[13].mxu0  ;;  %v456_v7 = vsel %vm136_vm2, %v447_v5, -inf }
 0x3c5   :  { %457 = vmax.xlane.f32.xlu0 %v456_v7  ;;  %v450_v8 = vpop.f32.mrb[14].mxu0 }
 0x3c6   :  { %v1517_v9 = vpop.f32.mrb[15].mxu0 }
 0x3d2   :  { %575 = vrot.lane.b32.xlu1 %v1875_v11, %s1748_s15 }
 0x3d6   :  { %573 = vrot.lane.b32.xlu1 %v1875_v11, %s1749_s16 }
 0x3da   :  { %743 = vrot.lane.b32.xlu1 %v1878_v14, %s1750_s17 }
 0x3db   :  { %625 = vrot.lane.b32.xlu0 %v1878_v14, %s1748_s15 }
 0x3df   :  { %623 = vrot.lane.b32.xlu0 %v1878_v14, %s1749_s16 }
 0x3e3   :  { %695 = vrot.lane.b32.xlu0 %v1875_v11, %s1750_s17 }
 0x44e   :  { %v455_v10 = vpop.xlane.xlu1 %454 }
 0x44f   :  { %v459_v12 = vsub.f32 %v397_v61, %v455_v10 }
 0x451   :  { %v461_v13 = vmul.f32 1.442695, %v459_v12 }
 0x452   :  { %v458_v15 = vpop.xlane.xlu0 %457  ;;  %v576_v20 = vpop.permute.xlu1 %575 }
 0x453   :  { %1655 = vpow2.f32 %v461_v13  ;;  %v460_v16 = vsub.f32 %v447_v5, %v458_v15  ;;  %v581_v23 = vsel %vm136_vm2, %v576_v20, 0 }
 0x455   :  { %v463_v17 = vmul.f32 1.442695, %v460_v16 }
 0x456   :  { %v626_v18 = vpop.permute.xlu0 %625  ;;  %v574_v26 = vpop.permute.xlu1 %573 }
 0x457   :  { %1657 = vpow2.f32 %v463_v17  ;;  %v631_v27 = vsel %vm136_vm2, %v626_v18, 0 }
 0x45a   :  { %v624_v22 = vpop.permute.xlu0 %623  ;;  %v744_v30 = vpop.permute.xlu1 %743 }
 0x45b   :  { %v749_v31 = vsel %vm259_vm3, %v744_v30, 0 }
 0x45d   :  { %v1951_v19 = vpop.eup %1655 }
 0x45e   :  { %v473_v21 = vpack.c.bf16 %v1951_v19, %v1951_v19  ;;  %v696_v28 = vpop.permute.xlu0 %695 }
 0x45f   :  { %v701_v29 = vsel %vm259_vm3, %v696_v28, 0 }
 0x460   :  { %1521 = vmatmul.mubr.msk.bf16.vlgmr.msra.gmra.mrb[12].mxu1 %vm136_vm2, %v473_v21 }
 0x461   :  { %v1957_v24 = vpop.eup %1657  ;;  %1531 = vmatpush3.bf16.xpose.msra.mxu1 %v581_v23  ;;  %1532 = vmatprep.mubr.msk.bf16.mxu1 %vm1743_vm0, %v1742_v0 }
 0x462   :  { %v474_v25 = vpack.c.bf16 %v1957_v24, %v1957_v24  ;;  %1542 = vmatprep.subr.bf16.mxu1 %v1742_v0 }
 0x464   :  { %1527 = vmatmul.mubr.msk.bf16.vlgmr.msra.gmra.mrb[16].mxu0 %vm136_vm2, %v474_v25 }
 0x465   :  { %1537 = vmatpush3.bf16.xpose.msra.mxu0 %v631_v27  ;;  %1538 = vmatprep.mubr.msk.bf16.mxu0 %vm1743_vm0, %v1742_v0 }
 0x466   :  { %1548 = vmatprep.subr.bf16.mxu0 %v1742_v0 }
 0x468   :  { %1533 = vmatmul.mubr.msk.bf16.vlgmr.msra.gmra.mrb[16].mxu1 %vm136_vm2, %v574_v26 }
 0x469   :  { %1543 = vmatpush3.bf16.msra.mxu1 %v701_v29  ;;  %1544 = vmatprep.mubr.msk.bf16.mxu1 %vm1743_vm0, %v1742_v0 }
 0x46a   :  { %1554 = vmatprep.subr.bf16.mxu1 %v1742_v0 }
 0x46c   :  { %1539 = vmatmul.mubr.msk.bf16.vlgmr.msra.gmra.mrb[20].mxu0 %vm136_vm2, %v624_v22 }
 0x46d   :  { %1549 = vmatpush3.bf16.msra.mxu0 %v749_v31  ;;  %1550 = vmatprep.mubr.msk.bf16.mxu0 %vm1743_vm0, %v1742_v0  ;;  %v465_v31 = vsel %vm136_vm2, %v1951_v19, 0.0 }
 0x46e   :  { %1560 = vmatprep.subr.bf16.mxu0 %v1742_v0 }
 0x533   :  { %v1979_v32 = vpop.f32.mrb[12].mxu1 }
 0x534   :  { %v1522_v33 = vpop.f32.mrb[13].mxu1 }
 0x535   :  { %v520_v34 = vpop.f32.mrb[14].mxu1 }
 0x536   :  { %v1523_v35 = vpop.f32.mrb[15].mxu1  ;;  %v468_v34 = vsel %vm136_vm2, %v1957_v24, 0.0 }
 0x537   :  { %v1981_v36 = vpop.f32.mrb[16].mxu0 }
 0x538   :  { %v1528_v37 = vpop.f32.mrb[17].mxu0 }
 0x539   :  { %v568_v38 = vpop.f32.mrb[18].mxu0 }
 0x53a   :  { %v1529_v39 = vpop.f32.mrb[19].mxu0 }
 0x53b   :  { %v617_v40 = vpop.f32.mrb[16].mxu1 }
 0x53c   :  { %v1534_v41 = vpop.f32.mrb[17].mxu1  ;;  %v673_v43 = vsel %vm136_vm2, %v617_v40, -inf }
 0x53d   :  { %674 = vmax.xlane.f32.xlu1 %v673_v43  ;;  %v620_v44 = vpop.f32.mrb[18].mxu1 }
 0x53e   :  { %v1535_v45 = vpop.f32.mrb[19].mxu1 }
 0x53f   :  { %v667_v47 = vpop.f32.mrb[20].mxu0 }
 0x540   :  { %v1540_v48 = vpop.f32.mrb[21].mxu0  ;;  %v676_v49 = vsel %vm136_vm2, %v667_v47, -inf }
 0x541   :  { %677 = vmax.xlane.f32.xlu0 %v676_v49  ;;  %v670_v50 = vpop.f32.mrb[22].mxu0  ;;  %v244_v49 = vsel %vm136_vm2, %v1911_v42, 0.0 }
 0x542   :  { %v1541_v51 = vpop.f32.mrb[23].mxu0 }
 0x54e   :  { %795 = vrot.lane.b32.xlu1 %v1875_v11, %s1751_s18 }
 0x552   :  { %793 = vrot.lane.b32.xlu1 %v1875_v11, %s1752_s19 }
 0x557   :  { %845 = vrot.lane.b32.xlu0 %v1878_v14, %s1751_s18 }
 0x55b   :  { %843 = vrot.lane.b32.xlu0 %v1878_v14, %s1752_s19 }
 0x5ca   :  { %v675_v52 = vpop.xlane.xlu1 %674 }
 0x5cb   :  { %v679_v54 = vsub.f32 %v617_v40, %v675_v52  ;;  %v247_v52 = vsel %vm136_vm2, %v1917_v46, 0.0 }
 0x5cd   :  { %v681_v55 = vmul.f32 1.442695, %v679_v54 }
 0x5ce   :  { %v678_v56 = vpop.xlane.xlu0 %677  ;;  %v796_v61 = vpop.permute.xlu1 %795 }
 0x5cf   :  { %1659 = vpow2.f32 %v681_v55  ;;  %v680_v58 = vsub.f32 %v667_v47, %v678_v56  ;;  %v801_v63 = vsel %vm136_vm2, %v796_v61, 0 }
 0x5d1   :  { %v683_v59 = vmul.f32 1.442695, %v680_v58 }
 0x5d2   :  { %v846_v2 = vpop.permute.xlu0 %845  ;;  %v794_v7 = vpop.permute.xlu1 %793 }
 0x5d3   :  { %1661 = vpow2.f32 %v683_v59  ;;  %v851_v6 = vsel %vm136_vm2, %v846_v2, 0 }
 0x5d6   :  { %v844_v8 = vpop.permute.xlu0 %843 }
 0x5d9   :  { %v1660_v60 = vpop.eup %1659 }
 0x5da   :  { %v693_v62 = vpack.c.bf16 %v1660_v60, %v1660_v60  ;;  %v685_v35 = vsel %vm136_vm2, %v1660_v60, 0.0 }
 0x5dc   :  { %1545 = vmatmul.mubr.msk.bf16.vlgmr.msra.gmra.mrb[20].mxu1 %vm136_vm2, %v693_v62 }
 0x5dd   :  { %v1662_v1 = vpop.eup %1661  ;;  %1555 = vmatpush3.bf16.xpose.msra.mxu1 %v801_v63  ;;  %1556 = vmatprep.mubr.msk.bf16.mxu1 %vm1743_vm0, %v1742_v0 }
 0x5de   :  { %v694_v5 = vpack.c.bf16 %v1662_v1, %v1662_v1  ;;  %1566 = vmatprep.subr.bf16.mxu1 %v1742_v0  ;;  %v688_v33 = vsel %vm136_vm2, %v1662_v1, 0.0 }
 0x5e0   :  { %1551 = vmatmul.mubr.msk.bf16.vlgmr.msra.gmra.mrb[24].mxu0 %vm136_vm2, %v694_v5 }
 0x5e1   :  { %1561 = vmatpush3.bf16.xpose.msra.mxu0 %v851_v6  ;;  %1562 = vmatprep.mubr.msk.bf16.mxu0 %vm1743_vm0, %v1742_v0  ;;  %v1643_v6 = vld [vmem:[%s2121_s3] sm:$0xff]  }
 0x5e2   :  { %1572 = vmatprep.subr.bf16.mxu0 %v1742_v0 }
 0x5e4   :  { %1557 = vmatmul.mubr.msk.bf16.vlgmr.msra.gmra.mrb[24].mxu1 %vm136_vm2, %v794_v7  ;;  %v1644_v7 = vld [vmem:[%s2121_s3 + $0x8] sm:$0xff]  }
 0x5e5   :  { %1568 = vmatprep.mubr.msk.bf16.mxu1 %vm1743_vm0, %v1742_v0 }
 0x5e8   :  { %1563 = vmatmul.mubr.msk.bf16.vlgmr.msra.gmra.mrb[28].mxu0 %vm136_vm2, %v844_v8 }
 0x5e9   :  { %1574 = vmatprep.mubr.msk.bf16.mxu0 %vm1743_vm0, %v1742_v0 }
 0x6af   :  { %v2005_v9 = vpop.f32.mrb[20].mxu1 }
 0x6b0   :  { %v1546_v10 = vpop.f32.mrb[21].mxu1 }
 0x6b1   :  { %v740_v12 = vpop.f32.mrb[22].mxu1 }
 0x6b2   :  { %v1547_v13 = vpop.f32.mrb[23].mxu1 }
 0x6b3   :  { %v2007_v15 = vpop.f32.mrb[24].mxu0 }
 0x6b4   :  { %v1552_v16 = vpop.f32.mrb[25].mxu0 }
 0x6b5   :  { %v788_v17 = vpop.f32.mrb[26].mxu0 }
 0x6b6   :  { %v1553_v18 = vpop.f32.mrb[27].mxu0 }
 0x6b7   :  { %v837_v20 = vpop.f32.mrb[24].mxu1 }
 0x6b8   :  { %v1558_v21 = vpop.f32.mrb[25].mxu1  ;;  %v893_v22 = vsel %vm136_vm2, %v837_v20, -inf }
 0x6b9   :  { %894 = vmax.xlane.f32.xlu1 %v893_v22  ;;  %v840_v23 = vpop.f32.mrb[26].mxu1 }
 0x6ba   :  { %v1559_v25 = vpop.f32.mrb[27].mxu1 }
 0x6bb   :  { %v887_v26 = vpop.f32.mrb[28].mxu0 }
 0x6bc   :  { %v1564_v27 = vpop.f32.mrb[29].mxu0  ;;  %v896_v28 = vsel %vm136_vm2, %v887_v26, -inf }
 0x6bd   :  { %897 = vmax.xlane.f32.xlu0 %v896_v28  ;;  %v890_v29 = vpop.f32.mrb[30].mxu0 }
 0x6be   :  { %v1565_v30 = vpop.f32.mrb[31].mxu0 }
 0x6ca   :  { %963 = vrot.lane.b32.xlu1 %v1878_v14, %s1753_s20 }
 0x6d3   :  { %915 = vrot.lane.b32.xlu0 %v1875_v11, %s1753_s20 }
 0x6ee   :  { %466 = vadd.xlane.f32.xlu1 %v465_v31 }
 0x6f2   :  { %689 = vadd.xlane.f32.xlu1 %v688_v33  ;;  %469 = vadd.xlane.f32.xlu0 %v468_v34 }
 0x6f6   :  { %686 = vadd.xlane.f32.xlu0 %v685_v35 }
 0x746   :  { %v895_v37 = vpop.xlane.xlu1 %894 }
 0x747   :  { %v899_v38 = vsub.f32 %v837_v20, %v895_v37 }
 0x749   :  { %v901_v39 = vmul.f32 1.442695, %v899_v38 }
 0x74a   :  { %v964_v14 = vpop.permute.xlu1 %963  ;;  %v898_v40 = vpop.xlane.xlu0 %897 }
 0x74b   :  { %1663 = vpow2.f32 %v901_v39  ;;  %v969_v11 = vsel %vm259_vm3, %v964_v14, 0  ;;  %v900_v19 = vsub.f32 %v887_v26, %v898_v40 }
 0x74c   :  { %1573 = vmatpush3.bf16.msra.mxu0 %v969_v11 }
 0x74d   :  { %v903_v41 = vmul.f32 1.442695, %v900_v19  ;;  %1586 = vmatprep.subr.bf16.mxu0 %v1742_v0 }
 0x74e   :  { %v916_v43 = vpop.permute.xlu0 %915 }
 0x74f   :  { %1665 = vpow2.f32 %v903_v41  ;;  %v921_v24 = vsel %vm259_vm3, %v916_v43, 0 }
 0x750   :  { %1567 = vmatpush3.bf16.msra.mxu1 %v921_v24 }
 0x751   :  { %1578 = vmatprep.subr.bf16.mxu1 %v1742_v0 }
 0x755   :  { %v1664_v44 = vpop.eup %1663 }
 0x756   :  { %v905_v45 = vsel %vm136_vm2, %v1664_v44, 0.0  ;;  %v913_v47 = vpack.c.bf16 %v1664_v44, %v1664_v44 }
 0x757   :  { %906 = vadd.xlane.f32.xlu0 %v905_v45 }
 0x758   :  { %1569 = vmatmul.mubr.msk.bf16.vlgmr.msra.gmra.mrb[28].mxu1 %vm136_vm2, %v913_v47 }
 0x759   :  { %v1666_v48 = vpop.eup %1665  ;;  %1582 = vmatprep.mubr.msk.bf16.mxu1 %vm1743_vm0, %v1742_v0  ;;  %1579 = vmatpush3.bf16.msra.mxu1 %v1643_v6 }
 0x75a   :  { %v908_v50 = vsel %vm136_vm2, %v1666_v48, 0.0  ;;  %v914_v51 = vpack.c.bf16 %v1666_v48, %v1666_v48  ;;  %1580 = vmatprep.subr.bf16.mxu1 %v1742_v0 }
 0x75b   :  { %245 = vadd.xlane.f32.xlu0 %v244_v49  ;;  %909 = vadd.xlane.f32.xlu1 %v908_v50 }
 0x75c   :  { %1575 = vmatmul.mubr.msk.bf16.vlgmr.msra.gmra.mrb[32].mxu0 %vm136_vm2, %v914_v51 }
 0x75d   :  { %1590 = vmatprep.mubr.msk.bf16.mxu0 %vm1743_vm0, %v1742_v0  ;;  %1581 = vmatpush3.bf16.msra.mxu1 %v1644_v7 }
 0x75e   :  { %1594 = vmatprep.subr.bf16.mxu1 %v1742_v0 }
 0x75f   :  { %248 = vadd.xlane.f32.xlu1 %v247_v52 }
 0x77b   :  { %v467_v54 = vpop.xlane.xlu1 %466 }
 0x77c   :  { %1667 = vrcp.f32 %v467_v54 }
 0x77f   :  { %v690_v55 = vpop.xlane.xlu1 %689  ;;  %v470_v56 = vpop.xlane.xlu0 %469 }
 0x780   :  { %1669 = vrcp.f32 %v470_v56 }
 0x781   :  { %1671 = vrcp.f32 %v690_v55 }
 0x783   :  { %v687_v42 = vpop.xlane.xlu0 %686 }
 0x784   :  { %1673 = vrcp.f32 %v687_v42 }
 0x786   :  { %v1668_v58 = vpop.eup %1667 }
 0x787   :  { %v571_v61 = vmul.f32 %v1668_v58, %v1979_v32 }
 0x78a   :  { %v1670_v59 = vpop.eup %1669 }
 0x78b   :  { %v1672_v60 = vpop.eup %1671  ;;  %v572_v62 = vmul.f32 %v1670_v59, %v1981_v36 }
 0x78c   :  { %v792_v2 = vmul.f32 %v1672_v60, %v2007_v15 }
 0x78d   :  { %v1626_v1 = vpack.i.bf16 %v572_v62, %v571_v61  ;;  %v1645_v61 = vld [vmem:[#allocation2] sm:$0xff]   ;;  %v1648_v62 = vld [vmem:[%s2127_s9 + $0x8] sm:$0xff]  }
 0x78e   :  { %v1674_v63 = vpop.eup %1673  ;;  %1587 = vmatpush3.bf16.msra.mxu0 %v1645_v61 }
 0x78f   :  { %v791_v46 = vmul.f32 %v1674_v63, %v2005_v9  ;;  %1627 = vrot.lane.b32.xlu0 %v1626_v1, %s1754_s21  ;;  %1588 = vmatprep.subr.bf16.mxu0 %v1742_v0 }
 0x791   :  { %v1631_v5 = vpack.i.bf16 %v792_v2, %v791_v46 }
 0x793   :  { %1632 = vrot.lane.b32.xlu1 %v1631_v5, %s1755_s22 }
 0x7e4   :  { %v907_v32 = vpop.xlane.xlu0 %906 }
 0x7e5   :  { %1675 = vrcp.f32 %v907_v32 }
 0x7e8   :  { %v910_v36 = vpop.xlane.xlu1 %909  ;;  %v246_v25 = vpop.xlane.xlu0 %245 }
 0x7e9   :  { %1677 = vrcp.f32 %v910_v36 }
 0x7ea   :  { %1679 = vrcp.f32 %v246_v25  ;;  %v1415_v25 = vld [vmem:[%s2124_s6] ss:$0 sm:$0xff] }
 0x7ec   :  { %v249_v26 = vpop.xlane.xlu1 %248 }
 0x7ed   :  { %1681 = vrcp.f32 %v249_v26 }
 0x7ef   :  { %v1676_v12 = vpop.eup %1675 }
 0x7f3   :  { %v1678_v15 = vpop.eup %1677 }
 0x7f4   :  { %v1680_v28 = vpop.eup %1679 }
 0x7f5   :  { %v351_v37 = vmul.f32 %v1680_v28, %v1939_v53  ;;  %v1410_v53 = vld [vmem:[%s2122_s4] ss:$0 sm:$0xff] }
 0x7f7   :  { %v1682_v30 = vpop.eup %1681 }
 0x7f8   :  { %v352_v38 = vmul.f32 %v1682_v30, %v1941_v57  ;;  %v1649_v30 = vld [vmem:[%s2127_s9 + $0x10] sm:$0xff]  }
 0x801   :  { %v1628_v27 = vpop.permute.xlu0 %1627 }
 0x802   :  { %v1630_v31 = vunpack.i.h.bf16 %v1628_v27  ;;  %v1629_v33 = vunpack.i.l.bf16 %v1628_v27 }
 0x804   :  { %v1038_v14 = vsel %vm136_vm2, %v352_v38, %v1630_v31  ;;  %v1037_v40 = vsel %vm136_vm2, %v351_v37, %v1629_v33  ;;  %v1650_v31 = vld [vmem:[%s2127_s9 + $0x18] sm:$0xff]   ;;  %v1416_v33 = vld [vmem:[%s2126_s8] ss:$0 sm:$0xff] }
 0x805   :  { %v1633_v29 = vpop.permute.xlu1 %1632 }
 0x806   :  { %v1635_v34 = vunpack.i.h.bf16 %v1633_v29  ;;  %v1634_v35 = vunpack.i.l.bf16 %v1633_v29 }
 0x808   :  { %v1040_v41 = vsel %vm1039_vm4, %v1037_v40, %v1634_v35  ;;  %v1041_v43 = vsel %vm1039_vm4, %v1038_v14, %v1635_v34 }
 0x82b   :  { %v957_v8 = vpop.f32.mrb[28].mxu1 }
 0x82c   :  { %v1570_v9 = vpop.f32.mrb[29].mxu1  ;;  %v1011_v17 = vmul.f32 %v1676_v12, %v957_v8 }
 0x82d   :  { %v960_v10 = vpop.f32.mrb[30].mxu1 }
 0x82e   :  { %v1571_v13 = vpop.f32.mrb[31].mxu1 }
 0x82f   :  { %v1005_v16 = vpop.f32.mrb[32].mxu0 }
 0x830   :  { %v1012_v18 = vmul.f32 %v1678_v15, %v1005_v16  ;;  %v1576_v20 = vpop.f32.mrb[33].mxu0 }
 0x831   :  { %v1008_v21 = vpop.f32.mrb[34].mxu0 }
 0x832   :  { %v1636_v22 = vpack.i.bf16 %v1012_v18, %v1011_v17  ;;  %v1577_v23 = vpop.f32.mrb[35].mxu0  ;;  %v1414_v18 = vld [vmem:[%s2123_s5] ss:$0 sm:$0xff] }
 0x834   :  { %1637 = vrot.lane.b32.xlu1 %v1636_v22, %s1756_s26 }
 0x8a6   :  { %v1638_v39 = vpop.permute.xlu1 %1637 }
 0x8a7   :  { %v1640_v11 = vunpack.i.h.bf16 %v1638_v39  ;;  %v1639_v19 = vunpack.i.l.bf16 %v1638_v39 }
 0x8a9   :  { %v1044_v24 = vsel %vm1042_vm5, %v1041_v43, %v1640_v11  ;;  %v1043_v44 = vsel %vm1042_vm5, %v1040_v41, %v1639_v19 }
 0x8aa   :  { %v1045_v45 = vpack.c.bf16 %v1044_v24, %v1043_v44 }
 0x8ac   :  { %1583 = vmatmul.mubr.msk.bf16.vlgmr.msra.gmra.mrb[32].mxu1 %vm86_vm1, %v1045_v45 }
 0x8ad   :  { %1602 = vmatprep.mubr.msk.bf16.mxu1 %vm1743_vm0, %v1742_v0 }
 0x97f   :  { %v1106_v57 = vpop.f32.mrb[32].mxu1 }
 0x980   :  { %v1107_v47 = vadd.f32 %v1410_v53, %v1106_v57  ;;  %v1584_v48 = vpop.f32.mrb[33].mxu1 }
 0x981   :  { %v1109_v49 = vpop.f32.mrb[34].mxu1 }
 0x982   :  { %v1113_v50 = vadd.f32 %v1107_v47, %v1858_v3  ;;  %v1110_v51 = vadd.f32 %v1410_v53, %v1109_v49  ;;  %v1585_v52 = vpop.f32.mrb[35].mxu1  ;;  %v1646_v3 = vld [vmem:[#allocation2 + $0x8] sm:$0xff]  }
 0x983   :  { %1589 = vmatpush3.bf16.msra.mxu0 %v1646_v3 }
 0x984   :  { %v1114_v54 = vadd.f32 %v1110_v51, %v1863_v4  ;;  %v1115_v55 = vsel %vm86_vm1, %v1113_v50, 0.0  ;;  %v1124_v56 = vmul.f32 %v1113_v50, %v1113_v50  ;;  %v1647_v4 = vld [vmem:[%s2127_s9] sm:$0xff]  }
 0x985   :  { %1116 = vadd.xlane.f32.xlu0 %v1115_v55  ;;  %1595 = vmatpush3.bf16.msra.mxu1 %v1647_v4 }
 0x986   :  { %v1118_v42 = vsel %vm86_vm1, %v1114_v54, 0.0  ;;  %v1126_v58 = vsel %vm86_vm1, %v1124_v56, 0.0  ;;  %v1125_v59 = vmul.f32 %v1114_v54, %v1114_v54  ;;  %1596 = vmatprep.subr.bf16.mxu1 %v1742_v0 }
 0x987   :  { %1119 = vadd.xlane.f32.xlu1 %v1118_v42 }
 0x988   :  { %v1129_v60 = vsel %vm86_vm1, %v1125_v59, 0.0 }
 0x989   :  { %1127 = vadd.xlane.f32.xlu0 %v1126_v58  ;;  %1597 = vmatpush3.bf16.msra.mxu1 %v1648_v62 }
 0x98a   :  { %1598 = vmatprep.subr.bf16.mxu1 %v1742_v0 }
 0x98d   :  { %1130 = vadd.xlane.f32.xlu0 %v1129_v60  ;;  %1599 = vmatpush3.bf16.msra.mxu1 %v1649_v30 }
 0x98e   :  { %1600 = vmatprep.subr.bf16.mxu1 %v1742_v0  ;;  %v1420_v0 = vld [vmem:[%s2128_s10] ss:$0 sm:$0xff] }
 0x991   :  { %1601 = vmatpush3.bf16.msra.mxu1 %v1650_v31 }
 0xa12   :  { %v1117_v63 = vpop.xlane.xlu0 %1116 }
 0xa13   :  { %v1122_v1 = vmul.f32 0.03125, %v1117_v63 }
 0xa14   :  { %v1120_v46 = vpop.xlane.xlu1 %1119 }
 0xa15   :  { %v1134_v5 = vmul.f32 %v1122_v1, %v1122_v1  ;;  %v1123_v6 = vmul.f32 0.03125, %v1120_v46  ;;  %v1138_v15 = vsub.f32 %v1113_v50, %v1122_v1 }
 0xa16   :  { %v1128_v2 = vpop.xlane.xlu0 %1127 }
 0xa17   :  { %v1132_v32 = vmul.f32 0.03125, %v1128_v2  ;;  %v1135_v8 = vmul.f32 %v1123_v6, %v1123_v6  ;;  %v1139_v20 = vsub.f32 %v1114_v54, %v1123_v6 }
 0xa19   :  { %v1136_v36 = vsub.f32 %v1132_v32, %v1134_v5 }
 0xa1a   :  { %v1131_v7 = vpop.xlane.xlu0 %1130 }
 0xa1b   :  { %v1140_v9 = vadd.f32 1e-05, %v1136_v36  ;;  %v1133_v10 = vmul.f32 0.03125, %v1131_v7  ;;  %v1426_v7 = vld [vmem:[%s2129_s11] ss:$0 sm:$0xff]  ;;  %s1713_s11 = scalar_lea.vmem %s1379_s7, 256 }
 0xa1c   :  { %p1714_p8 = scmp.ne.s32.totalorder %s1379_s7, %s1713_s11  ;;  %p1719_p10 = scmp.lt.s32.totalorder %s1713_s11, %s1713_s11 }
 0xa1d   :  { %1683 = vrsqrt.f32 %v1140_v9  ;;  %v1137_v12 = vsub.f32 %v1133_v10, %v1135_v8 }
 0xa1e   :  { %p1720_p11 = por %p1719_p10, %p1718_p9 }
 0xa1f   :  { %v1141_v13 = vadd.f32 1e-05, %v1137_v12  ;;  %v1427_v12 = vld [vmem:[%s2130_s12] ss:$0 sm:$0xff] }
 0xa20   :  { %p1721_p12 = pnand %p1720_p11, %p1714_p8 }
 0xa21   :  { %1685 = vrsqrt.f32 %v1141_v13 }
 0xa27   :  { %v1684_v16 = vpop.eup %1683 }
 0xa28   :  { %v1144_v17 = vmul.f32 %v1684_v16, %v1138_v15 }
 0xa2a   :  { %v1153_v23 = vmul.f32 %v1414_v18, %v1144_v17 }
 0xa2b   :  { %v1686_v21 = vpop.eup %1685 }
 0xa2c   :  { %v1145_v22 = vmul.f32 %v1686_v21, %v1139_v20  ;;  %v1162_v27 = vadd.f32 %v1415_v25, %v1153_v23 }
 0xa2e   :  { %v1154_v26 = vmul.f32 %v1414_v18, %v1145_v22 }
 0xa30   :  { %v1163_v28 = vadd.f32 %v1415_v25, %v1154_v26 }
 0xa32   :  { %v1164_v29 = vpack.c.bf16 %v1163_v28, %v1162_v27 }
 0xa34   :  { %1591 = vmatmul.mubr.msk.bf16.vlgmr.msra.gmra.mrb[36].mxu0 %vm86_vm1, %v1164_v29 }
 0xb07   :  { %v1225_v34 = vpop.f32.mrb[36].mxu0 }
 0xb08   :  { %v1226_v35 = vadd.f32 %v1416_v33, %v1225_v34  ;;  %v1592_v37 = vpop.f32.mrb[37].mxu0 }
 0xb09   :  { %v1228_v38 = vpop.f32.mrb[38].mxu0 }
 0xb0a   :  { %v1229_v39 = vadd.f32 %v1416_v33, %v1228_v38  ;;  %v1593_v14 = vpop.f32.mrb[39].mxu0  ;;  %v1232_v40 = vmax.f32 %v1226_v35, 0.0 }
 0xb0c   :  { %v1233_v11 = vmax.f32 %v1229_v39, 0.0 }
 0xb0e   :  { %v1234_v19 = vpack.c.bf16 %v1233_v11, %v1232_v40 }
 0xb10   :  { %1603 = vmatmul.mubr.msk.bf16.vlgmr.msra.gmra.mrb[36].mxu1 %vm1274_vm6, %v1234_v19 }
 0xbe3   :  { %v1312_v41 = vpop.f32.mrb[36].mxu1 }
 0xbe4   :  { %v1313_v43 = vadd.f32 %v1420_v0, %v1312_v41  ;;  %v1604_v24 = vpop.f32.mrb[37].mxu1 }
 0xbe5   :  { %v1315_v44 = vpop.f32.mrb[38].mxu1 }
 0xbe6   :  { %v1319_v45 = vmax.f32 %v1313_v43, 0.0  ;;  %v1316_v53 = vadd.f32 %v1420_v0, %v1315_v44  ;;  %v1605_v57 = vpop.f32.mrb[39].mxu1 }
 0xbe8   :  { %v1321_v47 = vadd.f32 %v1319_v45, %v1162_v27  ;;  %v1320_v48 = vmax.f32 %v1316_v53, 0.0 }
 0xbea   :  { %v1322_v49 = vadd.f32 %v1320_v48, %v1163_v28  ;;  %v1323_v50 = vsel %vm86_vm1, %v1321_v47, 0.0  ;;  %v1331_v51 = vmul.f32 %v1321_v47, %v1321_v47 }
 0xbeb   :  { %1324 = vadd.xlane.f32.xlu1 %v1323_v50 }
 0xbec   :  { %v1326_v52 = vsel %vm86_vm1, %v1322_v49, 0.0  ;;  %v1332_v54 = vmul.f32 %v1322_v49, %v1322_v49  ;;  %v1333_v55 = vsel %vm86_vm1, %v1331_v51, 0.0 }
 0xbed   :  { %1327 = vadd.xlane.f32.xlu0 %v1326_v52 }
 0xbee   :  { %v1336_v56 = vsel %vm86_vm1, %v1332_v54, 0.0 }
 0xbef   :  { %1334 = vadd.xlane.f32.xlu1 %v1333_v55 }
 0xbf1   :  { %1337 = vadd.xlane.f32.xlu0 %v1336_v56 }
 0xc78   :  { %v1325_v42 = vpop.xlane.xlu1 %1324 }
 0xc79   :  { %v1329_v58 = vmul.f32 0.03125, %v1325_v42 }
 0xc7a   :  { %v1328_v59 = vpop.xlane.xlu0 %1327 }
 0xc7b   :  { %v1330_v60 = vmul.f32 0.03125, %v1328_v59  ;;  %v1341_v3 = vmul.f32 %v1329_v58, %v1329_v58  ;;  %v1345_v32 = vsub.f32 %v1321_v47, %v1329_v58 }
 0xc7c   :  { %v1335_v61 = vpop.xlane.xlu1 %1334 }
 0xc7d   :  { %v1339_v4 = vmul.f32 0.03125, %v1335_v61  ;;  %v1342_v63 = vmul.f32 %v1330_v60, %v1330_v60  ;;  %v1346_v8 = vsub.f32 %v1322_v49, %v1330_v60 }
 0xc7e   :  { %v1338_v62 = vpop.xlane.xlu0 %1337 }
 0xc7f   :  { %v1343_v1 = vsub.f32 %v1339_v4, %v1341_v3  ;;  %v1340_v46 = vmul.f32 0.03125, %v1338_v62 }
 0xc81   :  { %v1347_v2 = vadd.f32 1e-05, %v1343_v1  ;;  %v1344_v5 = vsub.f32 %v1340_v46, %v1342_v63 }
 0xc83   :  { %1687 = vrsqrt.f32 %v1347_v2  ;;  %v1348_v6 = vadd.f32 1e-05, %v1344_v5 }
 0xc85   :  { %1689 = vrsqrt.f32 %v1348_v6 }
 0xc8d   :  { %v1688_v36 = vpop.eup %1687 }
 0xc8e   :  { %v1351_v9 = vmul.f32 %v1688_v36, %v1345_v32 }
 0xc8f   :  { %v1690_v10 = vpop.eup %1689 }
 0xc90   :  { %v1352_v13 = vmul.f32 %v1690_v10, %v1346_v8  ;;  %v1360_v15 = vmul.f32 %v1426_v7, %v1351_v9 }
 0xc92   :  { %v1361_v16 = vmul.f32 %v1426_v7, %v1352_v13  ;;  %v1369_v17 = vadd.f32 %v1427_v12, %v1360_v15 }
 0xc94   :  { %v1370_v18 = vadd.f32 %v1427_v12, %v1361_v16  ;;  %1371 = vst.msk [vmem:[#allocation5] sm:$0xff] %vm86_vm1, %v1369_v17 }
 0xc96   :  { %1372 = vst.msk [vmem:[#allocation5 + $0x8] sm:$0xff] %vm86_vm1, %v1370_v18 }
 0xc97   :  { %1724 = shalt.err (!%p1721_p12)
}
 0xc98   :  { %s1725_s25 = scalar_lea.hbm %s2131_s13, 256 }
 0xc99   :  { %p1726_p13 = scmp.ne.s32.totalorder %s2131_s13, %s1725_s25  ;;  %p1729_p0 = scmp.lt.u32.totalorder %s1725_s25, %s2131_s13 }
 0xc9b   :  { %p1731_p1 = pnand %p1729_p0, %p1726_p13 }
 0xc9d   :  { %1734 = shalt.err (!%p1731_p1)
}
 0xc9e   :  { %s1758_s28 = smov 128  }
 0xc9f   :  { %1384 = dma.vmem_to_hbm [thread:$0]  %s1379_s7, 256, %s2131_s13, [#allocation4], %s1758_s28, %s1758_s28, %s1754_s21  }
 0xca0   :  { %1737 = dma.done.wait [#allocation4], 256  }
 0xca1   :  { %1738 = vsyncadd [#allocation4], 4294967040 }
 0xca2   :  { %1388 = vsyncpa [#allocation3], 1 }
 0xca3   :  { %1389 = vsyncpa [#allocation4], 1 }

</bundles_post_ra>
